<compile_context>
chip_gen: v7x
topology: tpu7x:2x2x1
jax: 0.10.0
libtpu: 0.0.40
codegen_flags: <defaults>
</compile_context>

<pallas_src>
import jax
import jax.numpy as jnp
from jax.experimental import pallas as pl
from jax.experimental.pallas import tpu as pltpu

_LANE = 128      # vreg lane width
_SUBLANE = 8     # f32 sublane count


def _round_up(x, m):
    return ((x + m - 1) // m) * m


def _cdiv(a, b):
    return (a + b - 1) // b


def _vmem_budget_bytes():
    """~80% of this generation's per-core VMEM (v5e/v6e: 128 MiB, v7x: 64 MiB)."""
    try:
        return int(0.8 * pltpu.get_tpu_info().vmem_capacity_bytes)
    except Exception:
        return 48 << 20  # conservative fallback


def _pick_tile_b(B):
    """Batch tile: multiple of 8, near-equal tiles (minimal batch padding for
    B just above the ~512 target), and >=2 grid steps for moderate/large
    batches so the 'parallel' grid axis can shard over both v7x TensorCores."""
    B_al = _round_up(max(B, _SUBLANE), _SUBLANE)
    if B_al <= 2 * _SUBLANE:
        return B_al
    n_tiles = max(2, _cdiv(B_al, 512))
    return _round_up(_cdiv(B_al, n_tiles), _SUBLANE)


def _mlp_kernel(x_ref, w1_ref, b1_ref, w2_ref, b2_ref, o_ref):
    # x arrives in its original dtype; cast to the MXU compute dtype on the VPU
    # (hidden under the DMA/MXU) instead of materializing a cast copy in HBM.
    x = x_ref[...].astype(w1_ref.dtype)
    # hidden = relu(x @ W1 + b1); bf16 operands, f32 accumulation on the MXU.
    h = jnp.dot(x, w1_ref[...], preferred_element_type=jnp.float32)
    h = jnp.maximum(h + b1_ref[...], 0.0)                # b1: (1, n_hid_p) f32
    # out = relu(h @ W2 + b2); cast h to bf16 for the second MXU pass.
    o = jnp.dot(h.astype(w2_ref.dtype), w2_ref[...],
                preferred_element_type=jnp.float32)
    o = jnp.maximum(o + b2_ref[...], 0.0)                # b2: (1, n_out_p) f32
    o_ref[...] = o.astype(o_ref.dtype)


def make_network_forward(w1, b1, w2, b2, *, compute_dtype=jnp.bfloat16,
                         out_dtype=jnp.float32, batch_threshold=1024):
    """Build forward(x) = relu(relu(x @ W1 + b1) @ W2 + b2).

    Weights are lane-padded and cast to `compute_dtype` ONCE here and cached in
    the closure, so repeated Q-network inference pays no per-call weight
    pad/cast traffic.
    """
    n_in, n_hid = w1.shape
    n_out = w2.shape[1]
    assert b1.shape == (n_hid,) and w2.shape == (n_hid, n_out) and b2.shape == (n_out,)

    n_hid_p = _round_up(n_hid, _LANE)
    n_out_p = _round_up(n_out, _LANE)
    c_item = jnp.dtype(compute_dtype).itemsize
    o_item = jnp.dtype(out_dtype).itemsize

    # Zero padding is exact: padded hidden cols have zero W1-cols and zero bias
    # -> relu(0)=0 -> the matching (zero) W2 rows contribute nothing; padded
    # output cols are sliced off inside the jit.
    w1p = jnp.zeros((n_in, n_hid_p), compute_dtype).at[:, :n_hid].set(
        w1.astype(compute_dtype))
    b1p = jnp.zeros((1, n_hid_p), jnp.float32).at[0, :n_hid].set(
        b1.astype(jnp.float32))
    w2p = jnp.zeros((n_hid_p, n_out_p), compute_dtype).at[:n_hid, :n_out].set(
        w2.astype(compute_dtype))
    b2p = jnp.zeros((1, n_out_p), jnp.float32).at[0, :n_out].set(
        b2.astype(jnp.float32))
    w1p, b1p, w2p, b2p = jax.block_until_ready((w1p, b1p, w2p, b2p))

    w_bytes = (n_in * n_hid_p + n_hid_p * n_out_p) * c_item
    bias_bytes = (n_hid_p + n_out_p) * 4

    @jax.jit
    def _xla_forward(x):
        h = jnp.maximum(x.astype(jnp.float32) @ w1 + b1, 0.0)
        return jnp.maximum(h @ w2 + b2, 0.0).astype(out_dtype)

    def _build_pallas(single_buffer_weights):

        @jax.jit
        def _fwd(x):
            B = x.shape[0]
            x_item = jnp.dtype(x.dtype).itemsize
            vmem_cap = _vmem_budget_bytes()

            def vmem_need(tb):
                xb = 2 * tb * n_in * x_item            # x tile, double-buffered
                ob = 2 * tb * n_out_p * o_item         # out tile, double-buffered
                wb = (1 if single_buffer_weights else 2) * (w_bytes + bias_bytes)
                # In-kernel intermediates: f32 hidden + its bf16 cast + x cast.
                scratch = tb * n_hid_p * (4 + c_item) + tb * n_in * c_item
                return xb + ob + wb + scratch

            tile_b = _pick_tile_b(B)
            while vmem_need(tile_b) > vmem_cap and tile_b > _SUBLANE:
                tile_b = _round_up(tile_b // 2, _SUBLANE)
            if vmem_need(tile_b) > vmem_cap:
                # TODO(synk): add a grid axis over n_hid (f32 VMEM accumulator
                # init/finalized via pl.when, 'arbitrary' semantics) so huge
                # hidden layers don't need VMEM-resident weights; fall back to
                # plain XLA for now instead of breaking the kernel.
                return _xla_forward(x)

            B_p = _round_up(B, tile_b)
            xp = x if B_p == B else jnp.pad(x, ((0, B_p - B), (0, 0)))
            grid = (B_p // tile_b,)

            need = vmem_need(tile_b)
            cp_kwargs = dict(dimension_semantics=("parallel",))
            if need > (14 << 20):
                cp_kwargs["vmem_limit_bytes"] = int(min(vmem_cap, 2 * need))

            wkw = {}
            if single_buffer_weights:
                # Grid-invariant operands: double-buffering is pure VMEM waste.
                wkw = dict(pipeline_mode=pl.Buffered(buffer_count=1))

            cost = pl.CostEstimate(
                flops=2 * B_p * (n_in * n_hid_p + n_hid_p * n_out_p),
                transcendentals=0,
                bytes_accessed=(B_p * n_in * x_item + w_bytes + bias_bytes
                                + B_p * n_out_p * o_item),
            )

            out_p = pl.pallas_call(
                _mlp_kernel,
                out_shape=jax.ShapeDtypeStruct((B_p, n_out_p), out_dtype),
                grid_spec=pltpu.PrefetchScalarGridSpec(
                    num_scalar_prefetch=0,
                    grid=grid,
                    in_specs=[
                        # x tile in its original dtype; last dim == full array
                        # dim so no lane padding of x is required.
                        pl.BlockSpec((tile_b, n_in), lambda i: (i, 0)),
                        pl.BlockSpec((n_in, n_hid_p), lambda i: (0, 0), **wkw),
                        pl.BlockSpec((1, n_hid_p), lambda i: (0, 0), **wkw),
                        pl.BlockSpec((n_hid_p, n_out_p), lambda i: (0, 0), **wkw),
                        pl.BlockSpec((1, n_out_p), lambda i: (0, 0), **wkw),
                    ],
                    out_specs=pl.BlockSpec((tile_b, n_out_p), lambda i: (i, 0)),
                ),
                compiler_params=pltpu.CompilerParams(**cp_kwargs),
                cost_estimate=cost,
            )(xp, w1p, b1p, w2p, b2p)

            # Slice off batch + lane padding (fuses inside the jit).
            return out_p[:B, :n_out]

        return _fwd

    pallas_fwd = {True: _build_pallas(True), False: _build_pallas(False)}
    state = {"single_buffer_weights": True}

    def forward(x, *, use_pallas=None):
        orig_shape = x.shape
        if x.ndim != 2:
            x = x.reshape(-1, orig_shape[-1])
        if use_pallas is None:
            # At tiny batches a fused XLA dot+relu beats any kernel-call
            # overhead, so only use the kernel above a threshold.
            use_pallas = x.shape[0] >= batch_threshold
        if use_pallas:
            try:
                out = pallas_fwd[state["single_buffer_weights"]](x)
            except Exception:
                if not state["single_buffer_weights"]:
                    raise
                # pl.Buffered(1) not supported by this jax version: retry with
                # default (double-buffered) weight specs.
                state["single_buffer_weights"] = False
                out = pallas_fwd[False](x)
        else:
            out = _xla_forward(x)
        if len(orig_shape) != 2:
            out = out.reshape(*orig_shape[:-1], n_out)
        return out

    return forward


if __name__ == "__main__":
    key = jax.random.PRNGKey(0)
    k_x, k_w1, k_b1, k_w2, k_b2 = jax.random.split(key, 5)

    # Small shapes consistent with the module: Linear(n_in, n_hid) -> Linear(n_hid, n_out)
    batch = 8
    n_input_layer = 32
    n_hidden_layer = 64
    n_output_layer = 16

    x = jax.random.normal(k_x, (batch, n_input_layer), dtype=jnp.float32)

    # Deterministic synthetic parameters (kaiming_normal-ish scale, fan_in mode).
    w1 = jax.random.normal(k_w1, (n_input_layer, n_hidden_layer), jnp.float32) * (
        (2.0 / n_input_layer) ** 0.5)
    b1 = jax.random.normal(k_b1, (n_hidden_layer,), jnp.float32) * 0.01
    w2 = jax.random.normal(k_w2, (n_hidden_layer, n_output_layer), jnp.float32) * (
        (2.0 / n_hidden_layer) ** 0.5)
    b2 = jax.random.normal(k_b2, (n_output_layer,), jnp.float32) * 0.01

    forward = make_network_forward(w1, b1, w2, b2)

    # Force the Pallas path so the kernel itself is exercised (the dispatch
    # heuristic would correctly skip it at this toy batch size).
    out = forward(x, use_pallas=True)
    out = jax.block_until_ready(out)

    # Pure-JAX reference using the same bf16-rounded operands the kernel sees
    # (isolates kernel correctness from bf16 quantization).
    xb = x.astype(jnp.bfloat16).astype(jnp.float32)
    w1b = w1.astype(jnp.bfloat16).astype(jnp.float32)
    w2b = w2.astype(jnp.bfloat16).astype(jnp.float32)
    h_ref = jnp.maximum(xb @ w1b + b1, 0.0)
    h_ref = h_ref.astype(jnp.bfloat16).astype(jnp.float32)
    o_ref = jnp.maximum(h_ref @ w2b + b2, 0.0)

    assert out.shape == (batch, n_output_layer)
    assert jnp.allclose(out, o_ref, atol=1e-3, rtol=1e-3), (
        float(jnp.max(jnp.abs(out - o_ref))))

    print("KERNEL_OK")
</pallas_src>

<mosaic_0001>
module attributes {stable_mosaic.version = 11 : i64} {
  func.func @_mlp_kernel(%arg0: i32, %arg1: memref<8x32xf32, #tpu.memory_space<vmem>>, %arg2: memref<32x128xbf16, #tpu.memory_space<vmem>>, %arg3: memref<1x128xf32, #tpu.memory_space<vmem>>, %arg4: memref<128x128xbf16, #tpu.memory_space<vmem>>, %arg5: memref<1x128xf32, #tpu.memory_space<vmem>>, %arg6: memref<8x128xf32, #tpu.memory_space<vmem>>) attributes {dimension_semantics = [#tpu.dimension_semantics<parallel>], iteration_bounds = array<i64: 1>, scalar_prefetch = 0 : i64, scratch_operands = 0 : i64, tpu.core_type = #tpu.core_type<tc>, window_params = [{transform_indices = @transform_0, window_bounds = array<i64: 8, 32>}, {pipeline_mode = #tpu.pipeline_mode<synchronous>, transform_indices = @transform_1, window_bounds = array<i64: 32, 128>}, {pipeline_mode = #tpu.pipeline_mode<synchronous>, transform_indices = @transform_2, window_bounds = array<i64: 1, 128>}, {pipeline_mode = #tpu.pipeline_mode<synchronous>, transform_indices = @transform_3, window_bounds = array<i64: 128, 128>}, {pipeline_mode = #tpu.pipeline_mode<synchronous>, transform_indices = @transform_4, window_bounds = array<i64: 1, 128>}, {transform_indices = @transform_5, window_bounds = array<i64: 8, 128>}]} {
    %c0 = arith.constant 0 : index
    %c0_0 = arith.constant 0 : index
    %0 = vector.load %arg1[%c0, %c0_0] : memref<8x32xf32, #tpu.memory_space<vmem>>, vector<8x32xf32>
    %1 = arith.truncf %0 : vector<8x32xf32> to vector<8x32xbf16>
    %c0_1 = arith.constant 0 : index
    %c0_2 = arith.constant 0 : index
    %2 = vector.load %arg2[%c0_1, %c0_2] : memref<32x128xbf16, #tpu.memory_space<vmem>>, vector<32x128xbf16>
    %cst = arith.constant dense<0.000000e+00> : vector<8x128xf32>
    %3 = tpu.matmul %1, %2, %cst {dimension_numbers = #tpu.dot_dimension_numbers<[1], [0], [0], [1], [0, 0, 1, 1], [], []>} : vector<8x32xbf16>, vector<32x128xbf16>, vector<8x128xf32> -> vector<8x128xf32>
    %c0_3 = arith.constant 0 : index
    %c0_4 = arith.constant 0 : index
    %4 = vector.load %arg3[%c0_3, %c0_4] : memref<1x128xf32, #tpu.memory_space<vmem>>, vector<1x128xf32>
    %5 = vector.broadcast %4 : vector<1x128xf32> to vector<8x128xf32>
    %6 = arith.addf %3, %5 : vector<8x128xf32>
    %cst_5 = arith.constant 0.000000e+00 : f32
    %7 = vector.broadcast %cst_5 : f32 to vector<8x128xf32>
    %8 = arith.maximumf %6, %7 : vector<8x128xf32>
    %9 = arith.truncf %8 : vector<8x128xf32> to vector<8x128xbf16>
    %c0_6 = arith.constant 0 : index
    %c0_7 = arith.constant 0 : index
    %10 = vector.load %arg4[%c0_6, %c0_7] : memref<128x128xbf16, #tpu.memory_space<vmem>>, vector<128x128xbf16>
    %cst_8 = arith.constant dense<0.000000e+00> : vector<8x128xf32>
    %11 = tpu.matmul %9, %10, %cst_8 {dimension_numbers = #tpu.dot_dimension_numbers<[1], [0], [0], [1], [0, 0, 1, 1], [], []>} : vector<8x128xbf16>, vector<128x128xbf16>, vector<8x128xf32> -> vector<8x128xf32>
    %c0_9 = arith.constant 0 : index
    %c0_10 = arith.constant 0 : index
    %12 = vector.load %arg5[%c0_9, %c0_10] : memref<1x128xf32, #tpu.memory_space<vmem>>, vector<1x128xf32>
    %13 = vector.broadcast %12 : vector<1x128xf32> to vector<8x128xf32>
    %14 = arith.addf %11, %13 : vector<8x128xf32>
    %cst_11 = arith.constant 0.000000e+00 : f32
    %15 = vector.broadcast %cst_11 : f32 to vector<8x128xf32>
    %16 = arith.maximumf %14, %15 : vector<8x128xf32>
    %c0_12 = arith.constant 0 : index
    %c0_13 = arith.constant 0 : index
    %17 = vector.load %arg6[%c0_12, %c0_13] : memref<8x128xf32, #tpu.memory_space<vmem>>, vector<8x128xf32>
    tpu.vector_store %arg6[%c0_12, %c0_13], %16 {strides = array<i32>} : memref<8x128xf32, #tpu.memory_space<vmem>>, vector<8x128xf32>,
    return
  }
  func.func @transform_0(%arg0: i32) -> (i32, i32) {
    %c0_i32 = arith.constant 0 : i32
    %c0_i32_0 = arith.constant 0 : i32
    return %arg0, %c0_i32 : i32, i32
  }
  func.func @transform_1(%arg0: i32) -> (i32, i32) {
    %c0_i32 = arith.constant 0 : i32
    %c0_i32_0 = arith.constant 0 : i32
    %c0_i32_1 = arith.constant 0 : i32
    return %c0_i32, %c0_i32_0 : i32, i32
  }
  func.func @transform_2(%arg0: i32) -> (i32, i32) {
    %c0_i32 = arith.constant 0 : i32
    %c0_i32_0 = arith.constant 0 : i32
    %c0_i32_1 = arith.constant 0 : i32
    return %c0_i32, %c0_i32_0 : i32, i32
  }
  func.func @transform_3(%arg0: i32) -> (i32, i32) {
    %c0_i32 = arith.constant 0 : i32
    %c0_i32_0 = arith.constant 0 : i32
    %c0_i32_1 = arith.constant 0 : i32
    return %c0_i32, %c0_i32_0 : i32, i32
  }
  func.func @transform_4(%arg0: i32) -> (i32, i32) {
    %c0_i32 = arith.constant 0 : i32
    %c0_i32_0 = arith.constant 0 : i32
    %c0_i32_1 = arith.constant 0 : i32
    return %c0_i32, %c0_i32_0 : i32, i32
  }
  func.func @transform_5(%arg0: i32) -> (i32, i32) {
    %c0_i32 = arith.constant 0 : i32
    %c0_i32_0 = arith.constant 0 : i32
    return %arg0, %c0_i32 : i32, i32
  }
}

module attributes {stable_mosaic.version = 11 : i64} {
  func.func @_mlp_kernel(%arg0: i32, %arg1: memref<8x32xf32, #tpu.memory_space<vmem>>, %arg2: memref<32x128xbf16, #tpu.memory_space<vmem>>, %arg3: memref<1x128xf32, #tpu.memory_space<vmem>>, %arg4: memref<128x128xbf16, #tpu.memory_space<vmem>>, %arg5: memref<1x128xf32, #tpu.memory_space<vmem>>, %arg6: memref<8x128xf32, #tpu.memory_space<vmem>>) attributes {dimension_semantics = [#tpu.dimension_semantics<parallel>], iteration_bounds = array<i64: 1>, scalar_prefetch = 0 : i64, scratch_operands = 0 : i64, tpu.core_type = #tpu.core_type<tc>, window_params = [{transform_indices = @transform_0, window_bounds = array<i64: 8, 32>}, {pipeline_mode = #tpu.pipeline_mode<synchronous>, transform_indices = @transform_1, window_bounds = array<i64: 32, 128>}, {pipeline_mode = #tpu.pipeline_mode<synchronous>, transform_indices = @transform_2, window_bounds = array<i64: 1, 128>}, {pipeline_mode = #tpu.pipeline_mode<synchronous>, transform_indices = @transform_3, window_bounds = array<i64: 128, 128>}, {pipeline_mode = #tpu.pipeline_mode<synchronous>, transform_indices = @transform_4, window_bounds = array<i64: 1, 128>}, {transform_indices = @transform_5, window_bounds = array<i64: 8, 128>}]} {
    %c0 = arith.constant 0 : index
    %c0_0 = arith.constant 0 : index
    %0 = vector.load %arg1[%c0, %c0_0] : memref<8x32xf32, #tpu.memory_space<vmem>>, vector<8x32xf32>
    %1 = arith.truncf %0 : vector<8x32xf32> to vector<8x32xbf16>
    %c0_1 = arith.constant 0 : index
    %c0_2 = arith.constant 0 : index
    %2 = vector.load %arg2[%c0_1, %c0_2] : memref<32x128xbf16, #tpu.memory_space<vmem>>, vector<32x128xbf16>
    %cst = arith.constant dense<0.000000e+00> : vector<8x128xf32>
    %3 = tpu.matmul %1, %2, %cst {dimension_numbers = #tpu.dot_dimension_numbers<[1], [0], [0], [1], [0, 0, 1, 1], [], []>} : vector<8x32xbf16>, vector<32x128xbf16>, vector<8x128xf32> -> vector<8x128xf32>
    %c0_3 = arith.constant 0 : index
    %c0_4 = arith.constant 0 : index
    %4 = vector.load %arg3[%c0_3, %c0_4] : memref<1x128xf32, #tpu.memory_space<vmem>>, vector<1x128xf32>
    %5 = vector.broadcast %4 : vector<1x128xf32> to vector<8x128xf32>
    %6 = arith.addf %3, %5 : vector<8x128xf32>
    %cst_5 = arith.constant 0.000000e+00 : f32
    %7 = vector.broadcast %cst_5 : f32 to vector<8x128xf32>
    %8 = arith.maximumf %6, %7 : vector<8x128xf32>
    %9 = arith.truncf %8 : vector<8x128xf32> to vector<8x128xbf16>
    %c0_6 = arith.constant 0 : index
    %c0_7 = arith.constant 0 : index
    %10 = vector.load %arg4[%c0_6, %c0_7] : memref<128x128xbf16, #tpu.memory_space<vmem>>, vector<128x128xbf16>
    %cst_8 = arith.constant dense<0.000000e+00> : vector<8x128xf32>
    %11 = tpu.matmul %9, %10, %cst_8 {dimension_numbers = #tpu.dot_dimension_numbers<[1], [0], [0], [1], [0, 0, 1, 1], [], []>} : vector<8x128xbf16>, vector<128x128xbf16>, vector<8x128xf32> -> vector<8x128xf32>
    %c0_9 = arith.constant 0 : index
    %c0_10 = arith.constant 0 : index
    %12 = vector.load %arg5[%c0_9, %c0_10] : memref<1x128xf32, #tpu.memory_space<vmem>>, vector<1x128xf32>
    %13 = vector.broadcast %12 : vector<1x128xf32> to vector<8x128xf32>
    %14 = arith.addf %11, %13 : vector<8x128xf32>
    %cst_11 = arith.constant 0.000000e+00 : f32
    %15 = vector.broadcast %cst_11 : f32 to vector<8x128xf32>
    %16 = arith.maximumf %14, %15 : vector<8x128xf32>
    %c0_12 = arith.constant 0 : index
    %c0_13 = arith.constant 0 : index
    %17 = vector.load %arg6[%c0_12, %c0_13] : memref<8x128xf32, #tpu.memory_space<vmem>>, vector<8x128xf32>
    tpu.vector_store %arg6[%c0_12, %c0_13], %16 {strides = array<i32>} : memref<8x128xf32, #tpu.memory_space<vmem>>, vector<8x128xf32>,
    return
  }
  func.func @transform_0(%arg0: i32) -> (i32, i32) {
    %c0_i32 = arith.constant 0 : i32
    %c0_i32_0 = arith.constant 0 : i32
    return %arg0, %c0_i32 : i32, i32
  }
  func.func @transform_1(%arg0: i32) -> (i32, i32) {
    %c0_i32 = arith.constant 0 : i32
    %c0_i32_0 = arith.constant 0 : i32
    %c0_i32_1 = arith.constant 0 : i32
    return %c0_i32, %c0_i32_0 : i32, i32
  }
  func.func @transform_2(%arg0: i32) -> (i32, i32) {
    %c0_i32 = arith.constant 0 : i32
    %c0_i32_0 = arith.constant 0 : i32
    %c0_i32_1 = arith.constant 0 : i32
    return %c0_i32, %c0_i32_0 : i32, i32
  }
  func.func @transform_3(%arg0: i32) -> (i32, i32) {
    %c0_i32 = arith.constant 0 : i32
    %c0_i32_0 = arith.constant 0 : i32
    %c0_i32_1 = arith.constant 0 : i32
    return %c0_i32, %c0_i32_0 : i32, i32
  }
  func.func @transform_4(%arg0: i32) -> (i32, i32) {
    %c0_i32 = arith.constant 0 : i32
    %c0_i32_0 = arith.constant 0 : i32
    %c0_i32_1 = arith.constant 0 : i32
    return %c0_i32, %c0_i32_0 : i32, i32
  }
  func.func @transform_5(%arg0: i32) -> (i32, i32) {
    %c0_i32 = arith.constant 0 : i32
    %c0_i32_0 = arith.constant 0 : i32
    return %arg0, %c0_i32 : i32, i32
  }
}

</mosaic_0001>

<bundles_post_ra>
// kernel: _fwd.1
= control target key start
LH: loop header
LB: loop body
LE: loop exit
PB: predicated region body
PF: predicated region fallthrough
CT: control target
= control target key end

     0   :  { %10 = vsyncpa [#allocation3], 0  ;;  %s482_s0 = inlined_call_operand.hbm [shape: f32[8,32], index: 0, kind: input, shape index: {}]   ;;  %s483_s1 = inlined_call_operand.vmem [shape: bf16[32,128], index: 1, kind: input, shape index: {}]   ;;  %s484_s2 = inlined_call_operand.vmem [shape: f32[1,128], index: 2, kind: input, shape index: {}]   ;;  %s485_s3 = inlined_call_operand.hbm [shape: bf16[128,128], index: 3, kind: input, shape index: {}]   ;;  %s486_s4 = inlined_call_operand.vmem [shape: f32[1,128], index: 4, kind: input, shape index: {}]   ;;  %s487_s5 = inlined_call_operand.hbm [shape: f32[8,128], index: 5, kind: output, shape index: {}]  }
   0x1   :  { %11 = vsyncpa [#allocation6], 0 }
   0x2   :  { %12 = vsyncpa [#allocation4], 0  ;;  %s390_s18 = smov [#allocation2]   ;;  %s391_s20 = smov [#allocation5]  }
   0x3   :  { %s19_s19 = sshll.u32 %s390_s18, 4  ;;  %s32_s21 = sshll.u32 %s391_s20, 4  ;;  %s20_s19 = int_to_ptr.vmem [resolvable:$true] %s19_s19  ;;  %s427_s21 = int_to_ptr.vmem [resolvable:$true] %s32_s21 }
   0x4   :  { %s318_s24 = scalar_lea.hbm %s482_s0, 128 }
   0x5   :  { %p319_p0 = scmp.ne.s32.totalorder %s482_s0, %s318_s24  ;;  %p322_p1 = scmp.lt.u32.totalorder %s318_s24, %s482_s0 }
   0x7   :  { %p324_p2 = pnand %p322_p1, %p319_p0 }
   0x9   :  { %327 = shalt.err (!%p324_p2)
}
   0xa   :  { %s328_s29 = scalar_lea.vmem %s20_s19, 128  ;;  %p333_p4 = scmp.lt.s32.totalorder %s20_s19, %s20_s19 }
   0xb   :  { %p329_p3 = scmp.ne.s32.totalorder %s20_s19, %s328_s29  ;;  %p334_p5 = scmp.lt.s32.totalorder %s328_s29, %s328_s29 }
   0xd   :  { %p335_p6 = por %p334_p5, %p333_p4 }
   0xf   :  { %p336_p7 = pnand %p335_p6, %p329_p3 }
  0x11   :  { %339 = shalt.err (!%p336_p7)
}
  0x12   :  { %22 = dma.hbm_to_vmem [thread:$0]  %s482_s0, 128, %s20_s19, [#allocation3]  }
  0x13   :  { %s340_s9 = scalar_lea.hbm %s485_s3, 1024 }
  0x14   :  { %p341_p8 = scmp.ne.s32.totalorder %s485_s3, %s340_s9  ;;  %p344_p9 = scmp.lt.u32.totalorder %s340_s9, %s485_s3 }
  0x16   :  { %p346_p10 = pnand %p344_p9, %p341_p8 }
  0x18   :  { %349 = shalt.err (!%p346_p10)
}
  0x19   :  { %s350_s14 = scalar_lea.vmem %s427_s21, 1024  ;;  %p355_p12 = scmp.lt.s32.totalorder %s427_s21, %s427_s21 }
  0x1a   :  { %p351_p11 = scmp.ne.s32.totalorder %s427_s21, %s350_s14  ;;  %p356_p13 = scmp.lt.s32.totalorder %s350_s14, %s350_s14 }
  0x1c   :  { %p357_p0 = por %p356_p13, %p355_p12 }
  0x1e   :  { %p358_p1 = pnand %p357_p0, %p351_p11 }
  0x20   :  { %361 = shalt.err (!%p358_p1)
}
  0x21   :  { %s392_s0 = smov 64   ;;  %s393_s15 = smov 4  }
  0x22   :  { %38 = dma.hbm_to_vmem [thread:$0]  %s485_s3, 1024, %s427_s21, [#allocation6], %s392_s0, %s392_s0, %s393_s15  }
  0x23   :  { %384 = dma.done.wait [#allocation3], 128  }
  0x24   :  { %385 = vsyncadd [#allocation3], 4294967168 }
  0x25   :  { %386 = dma.done.wait [#allocation6], 1024  }
  0x26   :  { %387 = vsyncadd [#allocation6], 4294966272  ;;  %v394_v0 = vmov 0.0   ;;  %vm395_vm0 = vmmov 0   ;;  %v308_v1 = vld [vmem:[%s483_s1] sm:$0xff]   ;;  %v309_v2 = vld [vmem:[%s483_s1 + $0x8] sm:$0xff]  }
  0x27   :  { %273 = vmatprep.subr.bf16.mxu0 %v394_v0  ;;  %277 = vmatprep.mubr.msk.bf16.mxu0 %vm395_vm0, %v394_v0  ;;  %v48_v3 = vld [vmem:[#allocation2] sm:$0xff]  ;;  %v310_v4 = vld [vmem:[#allocation5] sm:$0xff]   ;;  %v311_v6 = vld [vmem:[#allocation5 + $0x8] sm:$0xff]   ;;  %vm73_vm1 = vcmask 261120   ;;  %s396_s24 = smov [#allocation7]  }
  0x28   :  { %281 = vmatprep.subr.bf16.mxu1 %v394_v0  ;;  %297 = vmatprep.mubr.msk.bf16.mxu1 %vm395_vm0, %v394_v0  ;;  %v49_v5 = vpack.c.bf16 %v48_v3, %v48_v3  ;;  %v312_v7 = vld [vmem:[#allocation5 + $0x10] sm:$0xff]   ;;  %v313_v8 = vld [vmem:[#allocation5 + $0x18] sm:$0xff]   ;;  %v314_v9 = vld [vmem:[#allocation5 + $0x20] sm:$0xff]   ;;  %s238_s25 = sshll.u32 %s396_s24, 4  ;;  %s239_s25 = int_to_ptr.vmem [resolvable:$true] %s238_s25 }
  0x29   :  { %274 = vmatpush3.bf16.msra.mxu0 %v308_v1  ;;  %282 = vmatpush3.bf16.msra.mxu1 %v310_v4  ;;  %v315_v10 = vld [vmem:[#allocation5 + $0x28] sm:$0xff]   ;;  %v316_v11 = vld [vmem:[#allocation5 + $0x30] sm:$0xff]   ;;  %v317_v12 = vld [vmem:[#allocation5 + $0x38] sm:$0xff]   ;;  %p367_p3 = scmp.lt.s32.totalorder %s239_s25, %s239_s25 }
  0x2a   :  { %275 = vmatprep.subr.bf16.mxu0 %v394_v0  ;;  %283 = vmatprep.subr.bf16.mxu1 %v394_v0  ;;  %v248_v13 = vld [vmem:[%s484_s2] ss:$0 sm:$0xff]  ;;  %s362_s2 = scalar_lea.vmem %s239_s25, 128 }
  0x2b   :  { %v252_v21 = vld [vmem:[%s486_s4] ss:$0 sm:$0xff]  ;;  %p363_p2 = scmp.ne.s32.totalorder %s239_s25, %s362_s2  ;;  %p368_p4 = scmp.lt.s32.totalorder %s362_s2, %s362_s2 }
  0x2d   :  { %276 = vmatpush3.bf16.msra.mxu0 %v309_v2  ;;  %284 = vmatpush3.bf16.msra.mxu1 %v311_v6  ;;  %p369_p5 = por %p368_p4, %p367_p3 }
  0x2e   :  { %285 = vmatprep.subr.bf16.mxu1 %v394_v0 }
  0x2f   :  { %p370_p6 = pnand %p369_p5, %p363_p2 }
  0x30   :  { %278 = vmatmul.mubr.msk.bf16.vlgmr.msra.gmra.mrb[0].mxu0 %vm73_vm1, %v49_v5 }
  0x31   :  { %286 = vmatpush3.bf16.msra.mxu1 %v312_v7 }
  0x32   :  { %287 = vmatprep.subr.bf16.mxu1 %v394_v0 }
  0x35   :  { %288 = vmatpush3.bf16.msra.mxu1 %v313_v8 }
  0x36   :  { %289 = vmatprep.subr.bf16.mxu1 %v394_v0 }
  0x39   :  { %290 = vmatpush3.bf16.msra.mxu1 %v314_v9 }
  0x3a   :  { %291 = vmatprep.subr.bf16.mxu1 %v394_v0 }
  0x3d   :  { %292 = vmatpush3.bf16.msra.mxu1 %v315_v10 }
  0x3e   :  { %293 = vmatprep.subr.bf16.mxu1 %v394_v0 }
  0x41   :  { %294 = vmatpush3.bf16.msra.mxu1 %v316_v11 }
  0x42   :  { %295 = vmatprep.subr.bf16.mxu1 %v394_v0 }
  0x45   :  { %296 = vmatpush3.bf16.msra.mxu1 %v317_v12 }
 0x103   :  { %v111_v14 = vpop.f32.mrb[0].mxu0 }
 0x104   :  { %v112_v15 = vadd.f32 %v248_v13, %v111_v14  ;;  %v279_v16 = vpop.f32.mrb[1].mxu0 }
 0x105   :  { %v114_v17 = vpop.f32.mrb[2].mxu0 }
 0x106   :  { %v117_v18 = vmax.f32 %v112_v15, 0.0  ;;  %v280_v19 = vpop.f32.mrb[3].mxu0 }
 0x108   :  { %v118_v20 = vpack.c.bf16 %v117_v18, %v117_v18 }
 0x10a   :  { %298 = vmatmul.mubr.bf16.vlgmr.msra.gmra.mrb[0].mxu1 %v118_v20 }
 0x1dd   :  { %v224_v22 = vpop.f32.mrb[0].mxu1 }
 0x1de   :  { %v225_v23 = vadd.f32 %v252_v21, %v224_v22  ;;  %v299_v24 = vpop.f32.mrb[1].mxu1 }
 0x1df   :  { %v227_v25 = vpop.f32.mrb[2].mxu1 }
 0x1e0   :  { %v230_v26 = vmax.f32 %v225_v23, 0.0  ;;  %v300_v27 = vpop.f32.mrb[3].mxu1 }
 0x1e2   :  { %231 = vst [vmem:[#allocation7] sm:$0xff] %v230_v26 }
 0x1e3   :  { %373 = shalt.err (!%p370_p6)
}
 0x1e4   :  { %s374_s4 = scalar_lea.hbm %s487_s5, 128 }
 0x1e5   :  { %p375_p7 = scmp.ne.s32.totalorder %s487_s5, %s374_s4  ;;  %p378_p8 = scmp.lt.u32.totalorder %s374_s4, %s487_s5 }
 0x1e7   :  { %p380_p9 = pnand %p378_p8, %p375_p7 }
 0x1e9   :  { %383 = shalt.err (!%p380_p9)
}
 0x1ea   :  { %241 = dma.vmem_to_hbm [thread:$0]  %s239_s25, 128, %s487_s5, [#allocation4]  }
 0x1eb   :  { %388 = dma.done.wait [#allocation4], 128  }
 0x1ec   :  { %389 = vsyncadd [#allocation4], 4294967168 }
 0x1ed   :  { %245 = vsyncpa [#allocation3], 1 }
 0x1ee   :  { %246 = vsyncpa [#allocation6], 1 }
 0x1ef   :  { %247 = vsyncpa [#allocation4], 1 }

// kernel: _fwd.1
= control target key start
LH: loop header
LB: loop body
LE: loop exit
PB: predicated region body
PF: predicated region fallthrough
CT: control target
= control target key end

     0   :  { %10 = vsyncpa [#allocation3], 0  ;;  %s482_s0 = inlined_call_operand.hbm [shape: f32[8,32], index: 0, kind: input, shape index: {}]   ;;  %s483_s1 = inlined_call_operand.vmem [shape: bf16[32,128], index: 1, kind: input, shape index: {}]   ;;  %s484_s2 = inlined_call_operand.vmem [shape: f32[1,128], index: 2, kind: input, shape index: {}]   ;;  %s485_s3 = inlined_call_operand.hbm [shape: bf16[128,128], index: 3, kind: input, shape index: {}]   ;;  %s486_s4 = inlined_call_operand.vmem [shape: f32[1,128], index: 4, kind: input, shape index: {}]   ;;  %s487_s5 = inlined_call_operand.hbm [shape: f32[8,128], index: 5, kind: output, shape index: {}]  }
   0x1   :  { %11 = vsyncpa [#allocation6], 0 }
   0x2   :  { %12 = vsyncpa [#allocation4], 0  ;;  %s390_s18 = smov [#allocation2]   ;;  %s391_s20 = smov [#allocation5]  }
   0x3   :  { %s19_s19 = sshll.u32 %s390_s18, 4  ;;  %s32_s21 = sshll.u32 %s391_s20, 4  ;;  %s20_s19 = int_to_ptr.vmem [resolvable:$true] %s19_s19  ;;  %s427_s21 = int_to_ptr.vmem [resolvable:$true] %s32_s21 }
   0x4   :  { %s318_s24 = scalar_lea.hbm %s482_s0, 128 }
   0x5   :  { %p319_p0 = scmp.ne.s32.totalorder %s482_s0, %s318_s24  ;;  %p322_p1 = scmp.lt.u32.totalorder %s318_s24, %s482_s0 }
   0x7   :  { %p324_p2 = pnand %p322_p1, %p319_p0 }
   0x9   :  { %327 = shalt.err (!%p324_p2)
}
   0xa   :  { %s328_s29 = scalar_lea.vmem %s20_s19, 128  ;;  %p333_p4 = scmp.lt.s32.totalorder %s20_s19, %s20_s19 }
   0xb   :  { %p329_p3 = scmp.ne.s32.totalorder %s20_s19, %s328_s29  ;;  %p334_p5 = scmp.lt.s32.totalorder %s328_s29, %s328_s29 }
   0xd   :  { %p335_p6 = por %p334_p5, %p333_p4 }
   0xf   :  { %p336_p7 = pnand %p335_p6, %p329_p3 }
  0x11   :  { %339 = shalt.err (!%p336_p7)
}
  0x12   :  { %22 = dma.hbm_to_vmem [thread:$0]  %s482_s0, 128, %s20_s19, [#allocation3]  }
  0x13   :  { %s340_s9 = scalar_lea.hbm %s485_s3, 1024 }
  0x14   :  { %p341_p8 = scmp.ne.s32.totalorder %s485_s3, %s340_s9  ;;  %p344_p9 = scmp.lt.u32.totalorder %s340_s9, %s485_s3 }
  0x16   :  { %p346_p10 = pnand %p344_p9, %p341_p8 }
  0x18   :  { %349 = shalt.err (!%p346_p10)
}
  0x19   :  { %s350_s14 = scalar_lea.vmem %s427_s21, 1024  ;;  %p355_p12 = scmp.lt.s32.totalorder %s427_s21, %s427_s21 }
  0x1a   :  { %p351_p11 = scmp.ne.s32.totalorder %s427_s21, %s350_s14  ;;  %p356_p13 = scmp.lt.s32.totalorder %s350_s14, %s350_s14 }
  0x1c   :  { %p357_p0 = por %p356_p13, %p355_p12 }
  0x1e   :  { %p358_p1 = pnand %p357_p0, %p351_p11 }
  0x20   :  { %361 = shalt.err (!%p358_p1)
}
  0x21   :  { %s392_s0 = smov 64   ;;  %s393_s15 = smov 4  }
  0x22   :  { %38 = dma.hbm_to_vmem [thread:$0]  %s485_s3, 1024, %s427_s21, [#allocation6], %s392_s0, %s392_s0, %s393_s15  }
  0x23   :  { %384 = dma.done.wait [#allocation3], 128  }
  0x24   :  { %385 = vsyncadd [#allocation3], 4294967168 }
  0x25   :  { %386 = dma.done.wait [#allocation6], 1024  }
  0x26   :  { %387 = vsyncadd [#allocation6], 4294966272  ;;  %v394_v0 = vmov 0.0   ;;  %vm395_vm0 = vmmov 0   ;;  %v308_v1 = vld [vmem:[%s483_s1] sm:$0xff]   ;;  %v309_v2 = vld [vmem:[%s483_s1 + $0x8] sm:$0xff]  }
  0x27   :  { %273 = vmatprep.subr.bf16.mxu0 %v394_v0  ;;  %277 = vmatprep.mubr.msk.bf16.mxu0 %vm395_vm0, %v394_v0  ;;  %v48_v3 = vld [vmem:[#allocation2] sm:$0xff]  ;;  %v310_v4 = vld [vmem:[#allocation5] sm:$0xff]   ;;  %v311_v6 = vld [vmem:[#allocation5 + $0x8] sm:$0xff]   ;;  %vm73_vm1 = vcmask 261120   ;;  %s396_s24 = smov [#allocation7]  }
  0x28   :  { %281 = vmatprep.subr.bf16.mxu1 %v394_v0  ;;  %297 = vmatprep.mubr.msk.bf16.mxu1 %vm395_vm0, %v394_v0  ;;  %v49_v5 = vpack.c.bf16 %v48_v3, %v48_v3  ;;  %v312_v7 = vld [vmem:[#allocation5 + $0x10] sm:$0xff]   ;;  %v313_v8 = vld [vmem:[#allocation5 + $0x18] sm:$0xff]   ;;  %v314_v9 = vld [vmem:[#allocation5 + $0x20] sm:$0xff]   ;;  %s238_s25 = sshll.u32 %s396_s24, 4  ;;  %s239_s25 = int_to_ptr.vmem [resolvable:$true] %s238_s25 }
  0x29   :  { %274 = vmatpush3.bf16.msra.mxu0 %v308_v1  ;;  %282 = vmatpush3.bf16.msra.mxu1 %v310_v4  ;;  %v315_v10 = vld [vmem:[#allocation5 + $0x28] sm:$0xff]   ;;  %v316_v11 = vld [vmem:[#allocation5 + $0x30] sm:$0xff]   ;;  %v317_v12 = vld [vmem:[#allocation5 + $0x38] sm:$0xff]   ;;  %p367_p3 = scmp.lt.s32.totalorder %s239_s25, %s239_s25 }
  0x2a   :  { %275 = vmatprep.subr.bf16.mxu0 %v394_v0  ;;  %283 = vmatprep.subr.bf16.mxu1 %v394_v0  ;;  %v248_v13 = vld [vmem:[%s484_s2] ss:$0 sm:$0xff]  ;;  %s362_s2 = scalar_lea.vmem %s239_s25, 128 }
  0x2b   :  { %v252_v21 = vld [vmem:[%s486_s4] ss:$0 sm:$0xff]  ;;  %p363_p2 = scmp.ne.s32.totalorder %s239_s25, %s362_s2  ;;  %p368_p4 = scmp.lt.s32.totalorder %s362_s2, %s362_s2 }
  0x2d   :  { %276 = vmatpush3.bf16.msra.mxu0 %v309_v2  ;;  %284 = vmatpush3.bf16.msra.mxu1 %v311_v6  ;;  %p369_p5 = por %p368_p4, %p367_p3 }
  0x2e   :  { %285 = vmatprep.subr.bf16.mxu1 %v394_v0 }
  0x2f   :  { %p370_p6 = pnand %p369_p5, %p363_p2 }
  0x30   :  { %278 = vmatmul.mubr.msk.bf16.vlgmr.msra.gmra.mrb[0].mxu0 %vm73_vm1, %v49_v5 }
  0x31   :  { %286 = vmatpush3.bf16.msra.mxu1 %v312_v7 }
  0x32   :  { %287 = vmatprep.subr.bf16.mxu1 %v394_v0 }
  0x35   :  { %288 = vmatpush3.bf16.msra.mxu1 %v313_v8 }
  0x36   :  { %289 = vmatprep.subr.bf16.mxu1 %v394_v0 }
  0x39   :  { %290 = vmatpush3.bf16.msra.mxu1 %v314_v9 }
  0x3a   :  { %291 = vmatprep.subr.bf16.mxu1 %v394_v0 }
  0x3d   :  { %292 = vmatpush3.bf16.msra.mxu1 %v315_v10 }
  0x3e   :  { %293 = vmatprep.subr.bf16.mxu1 %v394_v0 }
  0x41   :  { %294 = vmatpush3.bf16.msra.mxu1 %v316_v11 }
  0x42   :  { %295 = vmatprep.subr.bf16.mxu1 %v394_v0 }
  0x45   :  { %296 = vmatpush3.bf16.msra.mxu1 %v317_v12 }
 0x103   :  { %v111_v14 = vpop.f32.mrb[0].mxu0 }
 0x104   :  { %v112_v15 = vadd.f32 %v248_v13, %v111_v14  ;;  %v279_v16 = vpop.f32.mrb[1].mxu0 }
 0x105   :  { %v114_v17 = vpop.f32.mrb[2].mxu0 }
 0x106   :  { %v117_v18 = vmax.f32 %v112_v15, 0.0  ;;  %v280_v19 = vpop.f32.mrb[3].mxu0 }
 0x108   :  { %v118_v20 = vpack.c.bf16 %v117_v18, %v117_v18 }
 0x10a   :  { %298 = vmatmul.mubr.bf16.vlgmr.msra.gmra.mrb[0].mxu1 %v118_v20 }
 0x1dd   :  { %v224_v22 = vpop.f32.mrb[0].mxu1 }
 0x1de   :  { %v225_v23 = vadd.f32 %v252_v21, %v224_v22  ;;  %v299_v24 = vpop.f32.mrb[1].mxu1 }
 0x1df   :  { %v227_v25 = vpop.f32.mrb[2].mxu1 }
 0x1e0   :  { %v230_v26 = vmax.f32 %v225_v23, 0.0  ;;  %v300_v27 = vpop.f32.mrb[3].mxu1 }
 0x1e2   :  { %231 = vst [vmem:[#allocation7] sm:$0xff] %v230_v26 }
 0x1e3   :  { %373 = shalt.err (!%p370_p6)
}
 0x1e4   :  { %s374_s4 = scalar_lea.hbm %s487_s5, 128 }
 0x1e5   :  { %p375_p7 = scmp.ne.s32.totalorder %s487_s5, %s374_s4  ;;  %p378_p8 = scmp.lt.u32.totalorder %s374_s4, %s487_s5 }
 0x1e7   :  { %p380_p9 = pnand %p378_p8, %p375_p7 }
 0x1e9   :  { %383 = shalt.err (!%p380_p9)
}
 0x1ea   :  { %241 = dma.vmem_to_hbm [thread:$0]  %s239_s25, 128, %s487_s5, [#allocation4]  }
 0x1eb   :  { %388 = dma.done.wait [#allocation4], 128  }
 0x1ec   :  { %389 = vsyncadd [#allocation4], 4294967168 }
 0x1ed   :  { %245 = vsyncpa [#allocation3], 1 }
 0x1ee   :  { %246 = vsyncpa [#allocation6], 1 }
 0x1ef   :  { %247 = vsyncpa [#allocation4], 1 }

</bundles_post_ra>
